<compile_context>
chip_gen: v5e
topology: v5e:2x2
jax: 0.10.0
libtpu: 0.0.40
codegen_flags: <defaults>
</compile_context>

<pallas_src>
import functools

import jax
import jax.numpy as jnp
from jax import lax
from jax.experimental import pallas as pl
from jax.experimental.pallas import tpu as pltpu

_LANES = 128  # full array width == contiguous block DMA, minimal tail pad


def _round_up(x: int, m: int) -> int:
    return ((x + m - 1) // m) * m


def _mape_kernel(p_ref, t_ref, o_ref, acc_ref, *, valid_rows, block_rows, inner):
    """Streams one (block_rows, 128) tile into an (8, 128) VPU accumulator."""
    c = pl.program_id(0)  # outer "parallel" chunk (megacore sharding)
    i = pl.program_id(1)  # inner streaming-reduction axis

    @pl.when(i == 0)
    def _init():
        acc_ref[...] = jnp.zeros_like(acc_ref)

    # Cast AFTER the load so HBM traffic stays in the caller's dtype.
    t = t_ref[...].astype(jnp.float32)
    p = p_ref[...].astype(jnp.float32)
    # |t - p| / |t| == |(t - p) * (1/t)| : single abs, exact EUP reciprocal.
    err = jnp.abs((t - p) * pl.reciprocal(t, approx=False))

    # Mask rows beyond the real array: Pallas partial / clamped-duplicate
    # blocks read unspecified data there.  `valid_rows` is a trace-time
    # constant (shapes are static), so no scalar prefetch is needed.
    row0 = (c * inner + i) * block_rows
    gid = row0 + lax.broadcasted_iota(jnp.int32, err.shape, 0)
    err = jnp.where(gid < valid_rows, err, 0.0)

    # Fold (block_rows, 128) into the (8, 128) accumulator.  The reshape is
    # layout-free (sublane fold) and the axis-0 sum is pure vreg-wise VALU
    # adds — no cross-lane/sublane reduce per step.
    acc_ref[...] += err.reshape(block_rows // 8, 8, _LANES).sum(axis=0)

    @pl.when(i == pl.num_programs(1) - 1)
    def _finalize():
        # One XLU reduce per chunk; lane-dense (1, 128) partial write.
        o_ref[...] = jnp.full((1, _LANES), jnp.sum(acc_ref[...]), jnp.float32)


def _pick_config(n_rows: int):
    """Per-generation block rows / chunk count (VMEM + megacore gating)."""
    kind = ""
    try:
        kind = jax.devices()[0].device_kind.lower()
    except Exception:
        pass
    if "v7" in kind:                      # 2 TCs, 32 MiB scoped-VMEM default
        block_rows, chunks = 4096, 2      # 2 MiB f32 per input block
    elif "v6" in kind:                    # 1 TC, 32 MiB scoped-VMEM default
        block_rows, chunks = 8192, 1      # 4 MiB f32 per input block
    elif "v5p" in kind or "v4" in kind:   # other megacore (2-TC) chips
        block_rows, chunks = 4096, 2
    else:                                 # v5e & unknown: 16 MiB default binds
        block_rows, chunks = 4096, 1      # 2x2x2 MiB ~= 8 MiB, safely under
    block_rows = min(block_rows, _round_up(max(n_rows, 1), 8))
    return block_rows, chunks


def mape_loss(predictions: jax.Array, targets: jax.Array) -> jax.Array:
    """MAPE = mean(|targets - squeeze(predictions)| / |targets|) * 100."""
    p = jnp.squeeze(predictions)  # torch's .squeeze(): drop all size-1 dims
    t, p = jnp.broadcast_arrays(targets, p)
    n = int(p.size)

    C = _LANES
    p_flat = p.reshape(-1)
    t_flat = t.reshape(-1)
    pad = (-n) % C
    if pad:
        # Minimal tail pad (< 128 elems, ones -> exactly 0 contribution).
        # When n is already a multiple of 128 there is NO wrapper-side copy;
        # block/chunk misalignment is handled purely by the in-kernel mask.
        p_flat = jnp.pad(p_flat, (0, pad), constant_values=1)
        t_flat = jnp.pad(t_flat, (0, pad), constant_values=1)
    rows = (n + pad) // C
    p2 = p_flat.reshape(rows, C)
    t2 = t_flat.reshape(rows, C)

    br, chunks = _pick_config(rows)
    total_blocks = pl.cdiv(rows, br)
    chunks = max(1, min(chunks, total_blocks))
    inner = pl.cdiv(total_blocks, chunks)

    def idx_map(c, i):
        # Clamp so duplicate tail blocks (when chunks*inner > total_blocks)
        # stay in bounds; the in-kernel row mask zeroes their contribution.
        return (jnp.minimum(c * inner + i, total_blocks - 1), 0)

    kernel = functools.partial(
        _mape_kernel, valid_rows=rows, block_rows=br, inner=inner)

    partials = pl.pallas_call(
        kernel,
        out_shape=jax.ShapeDtypeStruct((1, chunks * C), jnp.float32),
        grid_spec=pltpu.PrefetchScalarGridSpec(
            num_scalar_prefetch=0,
            grid=(chunks, inner),
            in_specs=[
                pl.BlockSpec((br, C), idx_map),
                pl.BlockSpec((br, C), idx_map),
            ],
            # Lane-dense per-chunk partial; constant across the inner axis.
            out_specs=pl.BlockSpec((1, C), lambda c, i: (0, c)),
            scratch_shapes=[pltpu.VMEM((8, C), jnp.float32)],
        ),
        compiler_params=pltpu.CompilerParams(
            dimension_semantics=("parallel", "arbitrary"),
        ),
    )(p2, t2)

    # Each chunk broadcast its partial sum across 128 lanes; take lane 0.
    per_chunk = partials.reshape(chunks, C)[:, 0]
    return jnp.sum(per_chunk) * (100.0 / n)


def _reference(predictions, targets):
    p = jnp.squeeze(predictions)
    return jnp.mean(jnp.abs(targets - p) / jnp.abs(targets)) * 100.0


if __name__ == "__main__":
    key = jax.random.PRNGKey(0)
    kp, kt, kp2, kt2 = jax.random.split(key, 4)

    # Case 1: shapes matching the module's forward (predictions carry a
    # trailing singleton dim that .squeeze() removes; targets are flat).
    N1 = 256
    pred1 = jax.random.normal(kp, (N1, 1), dtype=jnp.float32)
    targ1 = jax.random.normal(kt, (N1,), dtype=jnp.float32) + 3.0  # |t| away from 0
    loss1 = mape_loss(pred1, targ1)
    jax.block_until_ready(loss1)
    ref1 = _reference(pred1, targ1)
    assert jnp.allclose(loss1, ref1, rtol=1e-5, atol=1e-5), (loss1, ref1)

    # Case 2: non-multiple-of-128 length, exercises tail pad + row mask.
    N2 = 1000
    pred2 = jax.random.normal(kp2, (N2, 1), dtype=jnp.float32)
    targ2 = jax.random.normal(kt2, (N2,), dtype=jnp.float32) + 3.0
    loss2 = mape_loss(pred2, targ2)
    jax.block_until_ready(loss2)
    ref2 = _reference(pred2, targ2)
    assert jnp.allclose(loss2, ref2, rtol=1e-5, atol=1e-5), (loss2, ref2)

    print("KERNEL_OK")
</pallas_src>

<mosaic_0001>
module attributes {stable_mosaic.version = 11 : i64} {
  func.func @_mape_kernel(%arg0: i32, %arg1: i32, %arg2: memref<8x128xf32, #tpu.memory_space<vmem>>, %arg3: memref<8x128xf32, #tpu.memory_space<vmem>>, %arg4: memref<1x128xf32, #tpu.memory_space<vmem>>, %arg5: memref<8x128xf32, #tpu.memory_space<vmem>>) attributes {dimension_semantics = [#tpu.dimension_semantics<parallel>, #tpu.dimension_semantics<arbitrary>], iteration_bounds = array<i64: 1, 1>, scalar_prefetch = 0 : i64, scratch_operands = 1 : i64, tpu.core_type = #tpu.core_type<tc>, window_params = [{transform_indices = @transform_0, window_bounds = array<i64: 8, 128>}, {transform_indices = @transform_1, window_bounds = array<i64: 8, 128>}, {transform_indices = @transform_2, window_bounds = array<i64: 1, 128>}]} {
    %c0_i32 = arith.constant 0 : i32
    %0 = arith.cmpi eq, %arg1, %c0_i32 : i32
    %1 = arith.extui %0 : i1 to i32
    %c0_i32_0 = arith.constant 0 : i32
    %2 = arith.cmpi ne, %1, %c0_i32_0 : i32
    scf.if %2 {
      %cst_11 = arith.constant 0.000000e+00 : f32
      %27 = vector.broadcast %cst_11 : f32 to vector<8x128xf32>
      %c0_12 = arith.constant 0 : index
      %c0_13 = arith.constant 0 : index
      %28 = vector.load %arg5[%c0_12, %c0_13] : memref<8x128xf32, #tpu.memory_space<vmem>>, vector<8x128xf32>
      tpu.vector_store %arg5[%c0_12, %c0_13], %27 {strides = array<i32>} : memref<8x128xf32, #tpu.memory_space<vmem>>, vector<8x128xf32>,
    } else {
    }
    %c0 = arith.constant 0 : index
    %c0_1 = arith.constant 0 : index
    %3 = vector.load %arg3[%c0, %c0_1] : memref<8x128xf32, #tpu.memory_space<vmem>>, vector<8x128xf32>
    %c0_2 = arith.constant 0 : index
    %c0_3 = arith.constant 0 : index
    %4 = vector.load %arg2[%c0_2, %c0_3] : memref<8x128xf32, #tpu.memory_space<vmem>>, vector<8x128xf32>
    %5 = arith.subf %3, %4 : vector<8x128xf32>
    %6 = tpu.reciprocal %3 : vector<8x128xf32> -> vector<8x128xf32>
    %7 = arith.mulf %5, %6 : vector<8x128xf32>
    %8 = math.absf %7 : vector<8x128xf32>
    %c1_i32 = arith.constant 1 : i32
    %9 = arith.muli %arg0, %c1_i32 : i32
    %10 = arith.addi %9, %arg1 : i32
    %c8_i32 = arith.constant 8 : i32
    %11 = arith.muli %10, %c8_i32 : i32
    %12 = tpu.iota {dimensions = array<i32: 0>} : vector<8x128xi32>
    %13 = vector.broadcast %11 : i32 to vector<8x128xi32>
    %14 = arith.addi %13, %12 : vector<8x128xi32>
    %c2_i32 = arith.constant 2 : i32
    %15 = vector.broadcast %c2_i32 : i32 to vector<8x128xi32>
    %16 = arith.cmpi slt, %14, %15 : vector<8x128xi32>
    %cst = arith.constant 0.000000e+00 : f32
    %17 = vector.broadcast %cst : f32 to vector<8x128xf32>
    %18 = arith.select %16, %8, %17 : vector<8x128xi1>, vector<8x128xf32>
    %c0_4 = arith.constant 0 : index
    %c0_5 = arith.constant 0 : index
    %19 = vector.load %arg5[%c0_4, %c0_5] : memref<8x128xf32, #tpu.memory_space<vmem>>, vector<8x128xf32>
    %20 = vector.shape_cast %18 : vector<8x128xf32> to vector<1x8x128xf32>
    %cst_6 = arith.constant dense<0.000000e+00> : vector<8x128xf32>
    %21 = vector.multi_reduction <add>, %20, %cst_6 [0] : vector<1x8x128xf32> to vector<8x128xf32>
    %22 = arith.addf %19, %21 : vector<8x128xf32>
    %c0_7 = arith.constant 0 : index
    %c0_8 = arith.constant 0 : index
    %23 = vector.load %arg5[%c0_7, %c0_8] : memref<8x128xf32, #tpu.memory_space<vmem>>, vector<8x128xf32>
    tpu.vector_store %arg5[%c0_7, %c0_8], %22 {strides = array<i32>} : memref<8x128xf32, #tpu.memory_space<vmem>>, vector<8x128xf32>,
    %c0_i32_9 = arith.constant 0 : i32
    %24 = arith.cmpi eq, %arg1, %c0_i32_9 : i32
    %25 = arith.extui %24 : i1 to i32
    %c0_i32_10 = arith.constant 0 : i32
    %26 = arith.cmpi ne, %25, %c0_i32_10 : i32
    scf.if %26 {
      %c0_11 = arith.constant 0 : index
      %c0_12 = arith.constant 0 : index
      %27 = vector.load %arg5[%c0_11, %c0_12] : memref<8x128xf32, #tpu.memory_space<vmem>>, vector<8x128xf32>
      %28 = vector.shape_cast %27 : vector<8x128xf32> to vector<1x8x128xf32>
      %cst_13 = arith.constant dense<0.000000e+00> : vector<1xf32>
      %29 = vector.multi_reduction <add>, %28, %cst_13 [1, 2] : vector<1x8x128xf32> to vector<1xf32>
      %30 = vector.shape_cast %29 : vector<1xf32> to vector<1x1x1xf32>
      %31 = vector.extract %30[0, 0, 0] : f32 from vector<1x1x1xf32>
      %32 = vector.broadcast %31 : f32 to vector<1x128xf32>
      %c0_14 = arith.constant 0 : index
      %c0_15 = arith.constant 0 : index
      %33 = vector.load %arg4[%c0_14, %c0_15] : memref<1x128xf32, #tpu.memory_space<vmem>>, vector<1x128xf32>
      tpu.vector_store %arg4[%c0_14, %c0_15], %32 {strides = array<i32>} : memref<1x128xf32, #tpu.memory_space<vmem>>, vector<1x128xf32>,
    } else {
    }
    return
  }
  func.func @transform_0(%arg0: i32, %arg1: i32) -> (i32, i32) {
    %c1_i32 = arith.constant 1 : i32
    %0 = arith.muli %arg0, %c1_i32 : i32
    %1 = arith.addi %0, %arg1 : i32
    %c0_i32 = arith.constant 0 : i32
    %2 = arith.minsi %1, %c0_i32 : i32
    %c0_i32_0 = arith.constant 0 : i32
    %c0_i32_1 = arith.constant 0 : i32
    return %2, %c0_i32_0 : i32, i32
  }
  func.func @transform_1(%arg0: i32, %arg1: i32) -> (i32, i32) {
    %c1_i32 = arith.constant 1 : i32
    %0 = arith.muli %arg0, %c1_i32 : i32
    %1 = arith.addi %0, %arg1 : i32
    %c0_i32 = arith.constant 0 : i32
    %2 = arith.minsi %1, %c0_i32 : i32
    %c0_i32_0 = arith.constant 0 : i32
    %c0_i32_1 = arith.constant 0 : i32
    return %2, %c0_i32_0 : i32, i32
  }
  func.func @transform_2(%arg0: i32, %arg1: i32) -> (i32, i32) {
    %c0_i32 = arith.constant 0 : i32
    %c0_i32_0 = arith.constant 0 : i32
    return %c0_i32, %arg0 : i32, i32
  }
}

</mosaic_0001>

<bundles_post_ra>
// kernel: tpu_custom_call.1
= control target key start
LH: loop header
LB: loop body
LE: loop exit
PB: predicated region body
PF: predicated region fallthrough
CT: control target
= control target key end

     0   :  { %7 = vsyncpa [#allocation4], 0  ;;  %s267_s0 = inlined_call_operand.hbm [shape: f32[2,128], index: 0, kind: input, shape index: {}]   ;;  %s268_s1 = inlined_call_operand.hbm [shape: f32[2,128], index: 1, kind: input, shape index: {}]   ;;  %s269_s2 = inlined_call_operand.hbm [shape: f32[1,128], index: 2, kind: output, shape index: {}]  }
   0x1   :  { %8 = vsyncpa [#allocation7], 0 }
   0x2   :  { %9 = vsyncpa [#allocation5], 0 }
   0x3   :  { %20 = vsyncadd [#allocation4], 96  ;;  %s25_s11 = sshll.u32 %s267_s0, 4  ;;  %s238_s12 = smov [#allocation3]   ;;  %s26_s11 = int_to_ptr.hbm [resolvable:$true] %s25_s11 }
   0x4   :  { %s27_s13 = sshll.u32 %s238_s12, 4  ;;  %s239_s14 = smov 32   ;;  %s28_s13 = int_to_ptr.vmem [resolvable:$true] %s27_s13 }
   0x5   :  { %s240_s15 = smov 2  }
   0x6   :  { %33 = dma.hbm_to_vmem [thread:$0]  %s26_s11, 32, %s28_s13, [#allocation4], %s239_s14, %s239_s14, %s240_s15  }
   0x7   :  { %44 = vsyncadd [#allocation7], 96  ;;  %s49_s18 = sshll.u32 %s268_s1, 4  ;;  %s241_s19 = smov [#allocation6]   ;;  %s50_s18 = int_to_ptr.hbm [resolvable:$true] %s49_s18 }
   0x8   :  { %s51_s20 = sshll.u32 %s241_s19, 4  ;;  %s52_s20 = int_to_ptr.vmem [resolvable:$true] %s51_s20 }
   0x9   :  { %57 = dma.hbm_to_vmem [thread:$0]  %s50_s18, 32, %s52_s20, [#allocation7], %s239_s14, %s239_s14, %s240_s15  }
   0xa   :  { %232 = dma.done.wait [#allocation4], 128  }
   0xb   :  { %233 = vsyncadd [#allocation4], 4294967168 }
   0xc   :  { %234 = dma.done.wait [#allocation7], 128  }
   0xd   :  { %235 = vsyncadd [#allocation7], 4294967168  ;;  %v83_v0 = vld [vmem:[#allocation6] sm:$0xff]  ;;  %v84_v6 = vld [vmem:[#allocation3] sm:$0xff]  ;;  %v104_v7 = vlaneseq  ;;  %s242_s0 = smov [#allocation8]   ;;  %s136_s23 = sshll.u32 %s269_s2, 4  ;;  %s137_s23 = int_to_ptr.hbm [resolvable:$true] %s136_s23 }
   0xe   :  { %158 = vrcp.f32 %v83_v0  ;;  %v97_v3 = vand.u32 2147483648, %v83_v0  ;;  %vm91_vm0 = vweird.f32 %v83_v0  ;;  %v95_v5 = vand.u32 2147483647, %v83_v0  ;;  %s134_s1 = sshll.u32 %s242_s0, 4  ;;  %s135_s1 = int_to_ptr.vmem [resolvable:$true] %s134_s1 }
   0xf   :  { %v85_v10 = vsub.f32 %v83_v0, %v84_v6  ;;  %v105_v12 = vshrl.u32 %v104_v7, 7 }
  0x10   :  { %v98_v9 = vor.u32 1.1754944e-38, %v97_v3  ;;  %vm96_vm3 = vcmp.eq.f32.partialorder %v95_v5, 8.507059e+37 }
  0x11   :  { %vm108_vm4 = vcmp.lt.s32.totalorder %v105_v12, 2 }
  0x14   :  { %v159_v1 = vpop.eup %158 }
  0x15   :  { %v87_v2 = vmul.f32 %v159_v1, %v83_v0  ;;  %vm92_vm1 = vweird.f32 %v159_v1 }
  0x16   :  { %vm93_vm2 = vmor %vm91_vm0, %vm92_vm1 }
  0x17   :  { %v88_v4 = vsub.f32 1.0, %v87_v2 }
  0x19   :  { %v89_v8 = vmul.f32 %v159_v1, %v88_v4 }
  0x1b   :  { %v90_v11 = vadd.f32 %v159_v1, %v89_v8 }
  0x1d   :  { %v94_v13 = vsel %vm93_vm2, %v159_v1, %v90_v11 }
  0x1e   :  { %v99_v14 = vsel %vm96_vm3, %v98_v9, %v94_v13 }
  0x1f   :  { %v100_v15 = vmul.f32 %v99_v14, %v85_v10 }
  0x21   :  { %v101_v16 = vand.u32 2147483647, %v100_v15 }
  0x23   :  { %v109_v17 = vsel %vm108_vm4, %v101_v16, 0.0 }
  0x24   :  { %118 = vadd.xlane.f32.xlu0 %v109_v17 }
  0x97   :  { %v119_v18 = vpop.xlane.xlu0 %118 }
  0x98   :  { %v120_v19 = vrot.slane %v119_v18, 4 }
  0x9a   :  { %v121_v20 = vadd.f32 %v120_v19, %v119_v18 }
  0x9c   :  { %v122_v21 = vrot.slane %v121_v20, 2 }
  0x9e   :  { %v123_v22 = vadd.f32 %v122_v21, %v121_v20 }
  0xa0   :  { %v124_v23 = vrot.slane %v123_v22, 1 }
  0xa2   :  { %v125_v24 = vadd.f32 %v124_v23, %v123_v22 }
  0xa4   :  { %151 = vpush %v125_v24 }
  0xd5   :  { %s152_s24 = spop %151 }
  0xd6   :  { %v127_v25 = vstv %s152_s24 }
  0xd7   :  { %128 = vst [vmem:[#allocation8] sm:$0x1] %v127_v25 }
  0xd8   :  { %139 = dma.vmem_to_hbm [thread:$0]  %s135_s1, 16, %s137_s23, [#allocation5]  }
  0xd9   :  { %236 = dma.done.wait [#allocation5], 16  }
  0xda   :  { %237 = vsyncadd [#allocation5], 4294967280 }
  0xdb   :  { %144 = vsyncpa [#allocation4], 1 }
  0xdc   :  { %145 = vsyncpa [#allocation7], 1 }
  0xdd   :  { %146 = vsyncpa [#allocation5], 1 }

</bundles_post_ra>
